<compile_context>
chip_gen: v7x
topology: tpu7x:2x2x1
jax: 0.10.0
libtpu: 0.0.40
codegen_flags: <defaults>
</compile_context>

<pallas_src>
import jax
import jax.numpy as jnp
from jax.experimental import pallas as pl
from jax.experimental.pallas import tpu as pltpu  # noqa: F401  (TPU backend)


def _module_wrapper_kernel(x_hbm_ref, o_hbm_ref):
    """ModuleWrapper.forward has no children to apply: identity.

    The output HBM buffer aliases the input buffer (input_output_aliases),
    so the kernel performs no loads, stores, or DMAs at all.
    """
    del x_hbm_ref, o_hbm_ref  # intentionally unused: no data movement needed


def module_wrapper_forward(x):
    """Pallas equivalent of ModuleWrapper.forward.

    Args:
      x: jnp array of any shape/dtype (HRNet uses NCHW activations).

    Returns:
      (x_out, kl) where x_out == x (output aliases the input HBM buffer;
      no copy inside the kernel) and kl == 0.0 (no submodule defines
      kl_loss(), so the KL sum is a compile-time constant).
    """
    out = pl.pallas_call(
        _module_wrapper_kernel,
        # Leave both operands in place in HBM: no BlockSpec tiling, no VMEM
        # residency, no (8,128) constraints, no per-generation VMEM budget.
        in_specs=[pl.BlockSpec(memory_space=pl.ANY)],
        out_specs=pl.BlockSpec(memory_space=pl.ANY),
        out_shape=jax.ShapeDtypeStruct(x.shape, x.dtype),
        # Output is the same HBM allocation as the input -> identity is free
        # (when x is donatable; otherwise XLA inserts one defensive copy).
        input_output_aliases={0: 0},
    )(x)

    # KL accumulation: no module defines kl_loss() -> exactly 0.0.
    # Weak-typed Python scalar so downstream KL sums constant-fold to zero.
    kl = 0.0
    return out, kl


if __name__ == "__main__":
    # ModuleWrapper has no parameters/weights (empty __init__).
    key = jax.random.PRNGKey(0)
    x = jax.random.normal(key, (2, 4, 16, 16), dtype=jnp.float32)  # NCHW

    y, kl = module_wrapper_forward(x)
    y = jax.block_until_ready(y)

    # Correctness checks: forward is the identity, kl is exactly 0.0.
    assert y.shape == x.shape and y.dtype == x.dtype
    assert bool(jnp.all(y == x))
    assert float(kl) == 0.0

    print("KERNEL_OK")
</pallas_src>

<mosaic_0001>
module attributes {stable_mosaic.version = 11 : i64} {
  func.func @_module_wrapper_kernel(%arg0: memref<2x4x16x16xf32, #tpu.memory_space<any>>, %arg1: memref<2x4x16x16xf32, #tpu.memory_space<any>>) attributes {dimension_semantics = [], scalar_prefetch = 0 : i64, scratch_operands = 0 : i64, tpu.core_type = #tpu.core_type<tc>} {
    return
  }
}

</mosaic_0001>

<bundles_post_ra>
// kernel: tpu_custom_call.1
= control target key start
LH: loop header
LB: loop body
LE: loop exit
PB: predicated region body
PF: predicated region fallthrough
CT: control target
= control target key end

     0   :  { %s16_s0 = inlined_call_operand.hbm [shape: f32[2,4,16,16], index: 0, kind: input, shape index: {}, may-alias: {0,1}]   ;;  %s17_s1 = inlined_call_operand.hbm [shape: f32[2,4,16,16], index: 1, kind: output, shape index: {}, may-alias: {0,1}]  }

</bundles_post_ra>
